<compile_context>
chip_gen: v7x
topology: tpu7x:2x2x1
jax: 0.10.0
libtpu: 0.0.40
codegen_flags: <defaults>
</compile_context>

<pallas_src>
import jax
import jax.numpy as jnp
from jax.experimental import pallas as pl
from jax.experimental.pallas import tpu as pltpu

LN_EPS = 1e-5                      # nn.LayerNorm default eps
VMEM_LIMIT = 48 * 1024 * 1024      # < v7x 64 MiB physical VMEM (128 MiB on v5e/v6e)


# ---------------------------------------------------------------------------
# Kernel 1: fused pre-norm residual Linear (demo encoder layer)
#   out = x + (LayerNorm(x; gamma, beta) @ W + bias)
# ---------------------------------------------------------------------------
def _fused_layer_kernel(x_ref, g_ref, b_ref, w_ref, bias_ref, o_ref):
    x = x_ref[...].astype(jnp.float32)                          # (TM, F)
    mu = jnp.mean(x, axis=-1, keepdims=True)
    xc = x - mu
    var = jnp.mean(xc * xc, axis=-1, keepdims=True)             # biased var (PyTorch LN)
    y = xc * jax.lax.rsqrt(var + LN_EPS)
    y = y * g_ref[...] + b_ref[...]                             # f32 VPU math
    # bf16 operands on the MXU, f32 accumulation (W is pre-cast to bf16).
    acc = jnp.dot(y.astype(jnp.bfloat16), w_ref[...],
                  preferred_element_type=jnp.float32)           # (TM, F)
    o_ref[...] = (x + acc + bias_ref[...]).astype(o_ref.dtype)  # residual epilogue


def _row_tile(n_rows: int, target: int = 512) -> int:
    """Largest tile <= target that is a multiple of 8 and divides n_rows
    (falls back to the full extent for small / non-8-aligned sizes)."""
    if n_rows <= target or n_rows % 8 != 0:
        return n_rows
    t = (target // 8) * 8
    while t > 8 and n_rows % t != 0:
        t -= 8
    return t


def fused_prenorm_linear(x2d, gamma, beta, w_bf16, bias, *, row_tile=512):
    """x2d: (R, F) f32.  Returns x2d + (LayerNorm(x2d) @ W + bias)."""
    R, F = x2d.shape
    tm = _row_tile(R, row_tile)
    return pl.pallas_call(
        _fused_layer_kernel,
        out_shape=jax.ShapeDtypeStruct((R, F), x2d.dtype),
        grid=(pl.cdiv(R, tm),),
        in_specs=[
            pl.BlockSpec((tm, F), lambda i: (i, 0)),   # activation stream
            pl.BlockSpec((1, F), lambda i: (0, 0)),    # LN gamma (VMEM resident)
            pl.BlockSpec((1, F), lambda i: (0, 0)),    # LN beta  (VMEM resident)
            pl.BlockSpec((F, F), lambda i: (0, 0)),    # W, bf16  (VMEM resident)
            pl.BlockSpec((1, F), lambda i: (0, 0)),    # linear bias (VMEM resident)
        ],
        out_specs=pl.BlockSpec((tm, F), lambda i: (i, 0)),
        compiler_params=pltpu.CompilerParams(
            dimension_semantics=("parallel",),         # v7x: both TCs split rows
            vmem_limit_bytes=VMEM_LIMIT,
        ),
    )(x2d, gamma.reshape(1, F), beta.reshape(1, F), w_bf16, bias.reshape(1, F))


# ---------------------------------------------------------------------------
# Kernel 2: GeoEncoder tail — mean over dim=-2 fused with the final LayerNorm.
# ---------------------------------------------------------------------------
def _mean_layernorm_kernel(x_ref, g_ref, b_ref, o_ref):
    x = x_ref[...].astype(jnp.float32)                # (TB, S, F)
    m = jnp.mean(x, axis=-2)                          # pool over seq -> (TB, F)
    mu = jnp.mean(m, axis=-1, keepdims=True)
    mc = m - mu
    var = jnp.mean(mc * mc, axis=-1, keepdims=True)
    y = mc * jax.lax.rsqrt(var + LN_EPS) * g_ref[...] + b_ref[...]
    o_ref[...] = y.astype(o_ref.dtype)


def mean_pool_layernorm(x, gamma, beta, *, batch_tile=256):
    """x: (B, S, F) -> LayerNorm(mean over dim=-2): (B, F)."""
    B, S, F = x.shape
    tb = _row_tile(B, batch_tile)
    return pl.pallas_call(
        _mean_layernorm_kernel,
        out_shape=jax.ShapeDtypeStruct((B, F), x.dtype),
        grid=(pl.cdiv(B, tb),),
        in_specs=[
            pl.BlockSpec((tb, S, F), lambda i: (i, 0, 0)),
            pl.BlockSpec((1, F), lambda i: (0, 0)),
            pl.BlockSpec((1, F), lambda i: (0, 0)),
        ],
        out_specs=pl.BlockSpec((tb, F), lambda i: (i, 0)),
        compiler_params=pltpu.CompilerParams(
            dimension_semantics=("parallel",),
            vmem_limit_bytes=VMEM_LIMIT,
        ),
    )(x, gamma.reshape(1, F), beta.reshape(1, F))


# ---------------------------------------------------------------------------
# GeoEncoder forward
# ---------------------------------------------------------------------------
def geo_encoder_forward(x, layers, final_gamma, final_beta):
    """Mirrors GeoEncoder.forward: apply layers, mean(dim=-2), LayerNorm."""
    # TODO(synk): GeoEncoder's `layer` is an arbitrary user-supplied module
    # (deep-copied `depth` times); here each layer is a JAX callable (glue),
    # instantiated in the demo as the fused pre-norm residual Linear kernel.
    for layer in layers:
        x = layer(x)
    return mean_pool_layernorm(x, final_gamma, final_beta)


def make_demo_layer(gamma, beta, w, bias):
    w_bf16 = w.astype(jnp.bfloat16)  # pre-cast once; resident in VMEM per call
    def layer(x):
        B, S, F = x.shape
        h = fused_prenorm_linear(x.reshape(B * S, F), gamma, beta, w_bf16, bias)
        return h.reshape(B, S, F)
    return layer


# ---------------------------------------------------------------------------
# demo + correctness check
# ---------------------------------------------------------------------------
if __name__ == "__main__":
    key = jax.random.PRNGKey(0)
    B, S, F, DEPTH = 2, 8, 128, 2          # F multiple of 128 -> lane-dense tiles
    keys = jax.random.split(key, 1 + 4 * DEPTH + 2)

    x = jax.random.normal(keys[0], (B, S, F), dtype=jnp.float32)

    layers = []
    layer_params = []
    for d in range(DEPTH):
        kw, kb, kg, kbeta = keys[1 + 4 * d: 5 + 4 * d]
        W = (jax.random.normal(kw, (F, F), dtype=jnp.float32) * 0.05)
        bias = (jax.random.normal(kb, (F,), dtype=jnp.float32) * 0.05)
        # nn.LayerNorm default init is weight=1, bias=0; perturb slightly so the
        # affine path is actually exercised by the check.
        gamma = 1.0 + 0.1 * jax.random.normal(kg, (F,), dtype=jnp.float32)
        beta = 0.1 * jax.random.normal(kbeta, (F,), dtype=jnp.float32)
        layers.append(make_demo_layer(gamma, beta, W, bias))
        layer_params.append((gamma, beta, W.astype(jnp.bfloat16), bias))

    final_gamma = 1.0 + 0.1 * jax.random.normal(keys[-2], (F,), dtype=jnp.float32)
    final_beta = 0.1 * jax.random.normal(keys[-1], (F,), dtype=jnp.float32)

    out = geo_encoder_forward(x, layers, final_gamma, final_beta)
    out = jax.block_until_ready(out)
    assert out.shape == (B, F)

    # Pure-JAX reference (same bf16-operand / f32-accumulate matmul policy).
    def ref_forward(x):
        h = x
        for gamma, beta, w_bf16, bias in layer_params:
            mu = jnp.mean(h, axis=-1, keepdims=True)
            var = jnp.mean((h - mu) ** 2, axis=-1, keepdims=True)
            hn = (h - mu) * jax.lax.rsqrt(var + LN_EPS) * gamma + beta
            sub = jnp.dot(hn.astype(jnp.bfloat16), w_bf16,
                          preferred_element_type=jnp.float32) + bias
            h = h + sub
        m = jnp.mean(h, axis=-2)
        mu = jnp.mean(m, axis=-1, keepdims=True)
        var = jnp.mean((m - mu) ** 2, axis=-1, keepdims=True)
        return (m - mu) * jax.lax.rsqrt(var + LN_EPS) * final_gamma + final_beta

    ref = jax.block_until_ready(ref_forward(x))
    assert jnp.allclose(out, ref, atol=5e-3, rtol=5e-3), "mismatch vs reference"
    print("KERNEL_OK")
</pallas_src>

<mosaic_0001>
module attributes {stable_mosaic.version = 11 : i64} {
  func.func @_fused_layer_kernel(%arg0: i32, %arg1: memref<16x128xf32, #tpu.memory_space<vmem>>, %arg2: memref<1x128xf32, #tpu.memory_space<vmem>>, %arg3: memref<1x128xf32, #tpu.memory_space<vmem>>, %arg4: memref<128x128xbf16, #tpu.memory_space<vmem>>, %arg5: memref<1x128xf32, #tpu.memory_space<vmem>>, %arg6: memref<16x128xf32, #tpu.memory_space<vmem>>) attributes {dimension_semantics = [#tpu.dimension_semantics<parallel>], iteration_bounds = array<i64: 1>, scalar_prefetch = 0 : i64, scratch_operands = 0 : i64, tpu.core_type = #tpu.core_type<tc>, window_params = [{transform_indices = @transform_0, window_bounds = array<i64: 16, 128>}, {pipeline_mode = #tpu.pipeline_mode<synchronous>, transform_indices = @transform_1, window_bounds = array<i64: 1, 128>}, {pipeline_mode = #tpu.pipeline_mode<synchronous>, transform_indices = @transform_2, window_bounds = array<i64: 1, 128>}, {pipeline_mode = #tpu.pipeline_mode<synchronous>, transform_indices = @transform_3, window_bounds = array<i64: 128, 128>}, {pipeline_mode = #tpu.pipeline_mode<synchronous>, transform_indices = @transform_4, window_bounds = array<i64: 1, 128>}, {transform_indices = @transform_5, window_bounds = array<i64: 16, 128>}]} {
    %c0 = arith.constant 0 : index
    %c0_0 = arith.constant 0 : index
    %0 = vector.load %arg1[%c0, %c0_0] : memref<16x128xf32, #tpu.memory_space<vmem>>, vector<16x128xf32>
    %cst = arith.constant dense<0.000000e+00> : vector<16xf32>
    %1 = vector.multi_reduction <add>, %0, %cst [1] : vector<16x128xf32> to vector<16xf32>
    %2 = vector.shape_cast %1 : vector<16xf32> to vector<16x1xf32>
    %cst_1 = arith.constant 1.280000e+02 : f32
    %3 = vector.broadcast %cst_1 : f32 to vector<16x1xf32>
    %4 = arith.divf %2, %3 : vector<16x1xf32>
    %5 = vector.broadcast %4 : vector<16x1xf32> to vector<16x128xf32>
    %6 = arith.subf %0, %5 : vector<16x128xf32>
    %7 = arith.mulf %6, %6 : vector<16x128xf32>
    %cst_2 = arith.constant dense<0.000000e+00> : vector<16xf32>
    %8 = vector.multi_reduction <add>, %7, %cst_2 [1] : vector<16x128xf32> to vector<16xf32>
    %9 = vector.shape_cast %8 : vector<16xf32> to vector<16x1xf32>
    %cst_3 = arith.constant 1.280000e+02 : f32
    %10 = vector.broadcast %cst_3 : f32 to vector<16x1xf32>
    %11 = arith.divf %9, %10 : vector<16x1xf32>
    %cst_4 = arith.constant 9.99999974E-6 : f32
    %12 = vector.broadcast %cst_4 : f32 to vector<16x1xf32>
    %13 = arith.addf %11, %12 : vector<16x1xf32>
    %14 = math.rsqrt %13 : vector<16x1xf32>
    %15 = vector.broadcast %14 : vector<16x1xf32> to vector<16x128xf32>
    %16 = arith.mulf %6, %15 : vector<16x128xf32>
    %c0_5 = arith.constant 0 : index
    %c0_6 = arith.constant 0 : index
    %17 = vector.load %arg2[%c0_5, %c0_6] : memref<1x128xf32, #tpu.memory_space<vmem>>, vector<1x128xf32>
    %18 = vector.broadcast %17 : vector<1x128xf32> to vector<16x128xf32>
    %19 = arith.mulf %16, %18 : vector<16x128xf32>
    %c0_7 = arith.constant 0 : index
    %c0_8 = arith.constant 0 : index
    %20 = vector.load %arg3[%c0_7, %c0_8] : memref<1x128xf32, #tpu.memory_space<vmem>>, vector<1x128xf32>
    %21 = vector.broadcast %20 : vector<1x128xf32> to vector<16x128xf32>
    %22 = arith.addf %19, %21 : vector<16x128xf32>
    %23 = arith.truncf %22 : vector<16x128xf32> to vector<16x128xbf16>
    %c0_9 = arith.constant 0 : index
    %c0_10 = arith.constant 0 : index
    %24 = vector.load %arg4[%c0_9, %c0_10] : memref<128x128xbf16, #tpu.memory_space<vmem>>, vector<128x128xbf16>
    %cst_11 = arith.constant dense<0.000000e+00> : vector<16x128xf32>
    %25 = tpu.matmul %23, %24, %cst_11 {dimension_numbers = #tpu.dot_dimension_numbers<[1], [0], [0], [1], [0, 0, 1, 1], [], []>} : vector<16x128xbf16>, vector<128x128xbf16>, vector<16x128xf32> -> vector<16x128xf32>
    %26 = arith.addf %0, %25 : vector<16x128xf32>
    %c0_12 = arith.constant 0 : index
    %c0_13 = arith.constant 0 : index
    %27 = vector.load %arg5[%c0_12, %c0_13] : memref<1x128xf32, #tpu.memory_space<vmem>>, vector<1x128xf32>
    %28 = vector.broadcast %27 : vector<1x128xf32> to vector<16x128xf32>
    %29 = arith.addf %26, %28 : vector<16x128xf32>
    %c0_14 = arith.constant 0 : index
    %c0_15 = arith.constant 0 : index
    %30 = vector.load %arg6[%c0_14, %c0_15] : memref<16x128xf32, #tpu.memory_space<vmem>>, vector<16x128xf32>
    tpu.vector_store %arg6[%c0_14, %c0_15], %29 {strides = array<i32>} : memref<16x128xf32, #tpu.memory_space<vmem>>, vector<16x128xf32>,
    return
  }
  func.func @transform_0(%arg0: i32) -> (i32, i32) {
    %c0_i32 = arith.constant 0 : i32
    %c0_i32_0 = arith.constant 0 : i32
    return %arg0, %c0_i32 : i32, i32
  }
  func.func @transform_1(%arg0: i32) -> (i32, i32) {
    %c0_i32 = arith.constant 0 : i32
    %c0_i32_0 = arith.constant 0 : i32
    %c0_i32_1 = arith.constant 0 : i32
    return %c0_i32, %c0_i32_0 : i32, i32
  }
  func.func @transform_2(%arg0: i32) -> (i32, i32) {
    %c0_i32 = arith.constant 0 : i32
    %c0_i32_0 = arith.constant 0 : i32
    %c0_i32_1 = arith.constant 0 : i32
    return %c0_i32, %c0_i32_0 : i32, i32
  }
  func.func @transform_3(%arg0: i32) -> (i32, i32) {
    %c0_i32 = arith.constant 0 : i32
    %c0_i32_0 = arith.constant 0 : i32
    %c0_i32_1 = arith.constant 0 : i32
    return %c0_i32, %c0_i32_0 : i32, i32
  }
  func.func @transform_4(%arg0: i32) -> (i32, i32) {
    %c0_i32 = arith.constant 0 : i32
    %c0_i32_0 = arith.constant 0 : i32
    %c0_i32_1 = arith.constant 0 : i32
    return %c0_i32, %c0_i32_0 : i32, i32
  }
  func.func @transform_5(%arg0: i32) -> (i32, i32) {
    %c0_i32 = arith.constant 0 : i32
    %c0_i32_0 = arith.constant 0 : i32
    return %arg0, %c0_i32 : i32, i32
  }
}

</mosaic_0001>

<bundles_post_ra>
// kernel: tpu_custom_call.1
= control target key start
LH: loop header
LB: loop body
LE: loop exit
PB: predicated region body
PF: predicated region fallthrough
CT: control target
= control target key end

     0   :  { %10 = vsyncpa [#allocation3], 0  ;;  %s463_s0 = inlined_call_operand.hbm [shape: f32[16,128], index: 0, kind: input, shape index: {}]   ;;  %s464_s1 = inlined_call_operand.vmem [shape: f32[1,128], index: 1, kind: input, shape index: {}]   ;;  %s465_s2 = inlined_call_operand.vmem [shape: f32[1,128], index: 2, kind: input, shape index: {}]   ;;  %s466_s3 = inlined_call_operand.hbm [shape: bf16[128,128], index: 3, kind: input, shape index: {}]   ;;  %s467_s4 = inlined_call_operand.vmem [shape: f32[1,128], index: 4, kind: input, shape index: {}]   ;;  %s468_s5 = inlined_call_operand.hbm [shape: f32[16,128], index: 5, kind: output, shape index: {}]  }
   0x1   :  { %11 = vsyncpa [#allocation6], 0 }
   0x2   :  { %12 = vsyncpa [#allocation4], 0  ;;  %s363_s18 = smov [#allocation2]   ;;  %s291_s22 = scalar_lea.hbm %s463_s0, 256 }
   0x3   :  { %s18_s19 = sshll.u32 %s363_s18, 4  ;;  %p292_p0 = scmp.ne.s32.totalorder %s463_s0, %s291_s22  ;;  %s19_s19 = int_to_ptr.vmem [resolvable:$true] %s18_s19 }
   0x4   :  { %p295_p1 = scmp.lt.u32.totalorder %s291_s22, %s463_s0 }
   0x6   :  { %p297_p2 = pnand %p295_p1, %p292_p0 }
   0x8   :  { %300 = shalt.err (!%p297_p2)
}
   0x9   :  { %s301_s27 = scalar_lea.vmem %s19_s19, 256  ;;  %p306_p4 = scmp.lt.s32.totalorder %s19_s19, %s19_s19 }
   0xa   :  { %p302_p3 = scmp.ne.s32.totalorder %s19_s19, %s301_s27  ;;  %p307_p5 = scmp.lt.s32.totalorder %s301_s27, %s301_s27 }
   0xc   :  { %p308_p6 = por %p307_p5, %p306_p4 }
   0xe   :  { %p309_p7 = pnand %p308_p6, %p302_p3 }
  0x10   :  { %312 = shalt.err (!%p309_p7)
}
  0x11   :  { %s364_s28 = smov 128   ;;  %s365_s29 = smov 8  }
  0x12   :  { %24 = dma.hbm_to_vmem [thread:$0]  %s463_s0, 256, %s19_s19, [#allocation3], %s364_s28, %s364_s28, %s365_s29  }
  0x13   :  { %s366_s7 = smov [#allocation5]   ;;  %s313_s11 = scalar_lea.hbm %s466_s3, 1024 }
  0x14   :  { %s34_s8 = sshll.u32 %s366_s7, 4  ;;  %p314_p8 = scmp.ne.s32.totalorder %s466_s3, %s313_s11  ;;  %s35_s8 = int_to_ptr.vmem [resolvable:$true] %s34_s8 }
  0x15   :  { %p317_p9 = scmp.lt.u32.totalorder %s313_s11, %s466_s3 }
  0x17   :  { %p319_p10 = pnand %p317_p9, %p314_p8 }
  0x19   :  { %322 = shalt.err (!%p319_p10)
}
  0x1a   :  { %s323_s16 = scalar_lea.vmem %s35_s8, 1024  ;;  %p328_p12 = scmp.lt.s32.totalorder %s35_s8, %s35_s8 }
  0x1b   :  { %p324_p11 = scmp.ne.s32.totalorder %s35_s8, %s323_s16  ;;  %p329_p13 = scmp.lt.s32.totalorder %s323_s16, %s323_s16 }
  0x1d   :  { %p330_p0 = por %p329_p13, %p328_p12 }
  0x1f   :  { %p331_p1 = pnand %p330_p0, %p324_p11 }
  0x21   :  { %334 = shalt.err (!%p331_p1)
}
  0x22   :  { %s367_s0 = smov 64   ;;  %s368_s17 = smov 4  }
  0x23   :  { %40 = dma.hbm_to_vmem [thread:$0]  %s466_s3, 1024, %s35_s8, [#allocation6], %s367_s0, %s367_s0, %s368_s17  }
  0x24   :  { %357 = dma.done.wait [#allocation3], 256  }
  0x25   :  { %358 = vsyncadd [#allocation3], 4294967040 }
  0x26   :  { %359 = dma.done.wait [#allocation6], 1024  }
  0x27   :  { %360 = vsyncadd [#allocation6], 4294966272  ;;  %v429_v0 = vld [vmem:[#allocation2] sm:$0xff]  ;;  %v431_v1 = vld [vmem:[#allocation2 + $0x8] sm:$0xff]  ;;  %v369_v3 = vmov 0.0   ;;  %vm370_vm0 = vmmov 0  }
  0x28   :  { %52 = vadd.xlane.f32.xlu0 %v429_v0  ;;  %v279_v2 = vld [vmem:[#allocation5] sm:$0xff]   ;;  %250 = vmatprep.subr.bf16.mxu0 %v369_v3  ;;  %v280_v12 = vld [vmem:[#allocation5 + $0x8] sm:$0xff]   ;;  %v281_v13 = vld [vmem:[#allocation5 + $0x10] sm:$0xff]  }
  0x29   :  { %251 = vmatpush3.bf16.msra.mxu0 %v279_v2  ;;  %v282_v14 = vld [vmem:[#allocation5 + $0x18] sm:$0xff]   ;;  %v283_v15 = vld [vmem:[#allocation5 + $0x20] sm:$0xff]   ;;  %266 = vmatprep.mubr.msk.bf16.mxu0 %vm370_vm0, %v369_v3  ;;  %v284_v16 = vld [vmem:[#allocation5 + $0x28] sm:$0xff]  }
  0x2a   :  { %252 = vmatprep.subr.bf16.mxu0 %v369_v3  ;;  %v285_v17 = vld [vmem:[#allocation5 + $0x30] sm:$0xff]   ;;  %v286_v18 = vld [vmem:[#allocation5 + $0x38] sm:$0xff]  }
  0x2b   :  { %v230_v27 = vld [vmem:[%s464_s1] ss:$0 sm:$0xff]  ;;  %s371_s1 = smov [#allocation7]  }
  0x2c   :  { %54 = vadd.xlane.f32.xlu0 %v431_v1  ;;  %v231_v31 = vld [vmem:[%s465_s2] ss:$0 sm:$0xff]  ;;  %s217_s25 = sshll.u32 %s371_s1, 4  ;;  %s218_s25 = int_to_ptr.vmem [resolvable:$true] %s217_s25 }
  0x2d   :  { %253 = vmatpush3.bf16.msra.mxu0 %v280_v12  ;;  %v240_v37 = vld [vmem:[%s467_s4] ss:$0 sm:$0xff]  ;;  %s335_s2 = scalar_lea.vmem %s218_s25, 256  ;;  %p340_p3 = scmp.lt.s32.totalorder %s218_s25, %s218_s25 }
  0x2e   :  { %254 = vmatprep.subr.bf16.mxu0 %v369_v3  ;;  %p336_p2 = scmp.ne.s32.totalorder %s218_s25, %s335_s2  ;;  %p341_p4 = scmp.lt.s32.totalorder %s335_s2, %s335_s2 }
  0x30   :  { %p342_p5 = por %p341_p4, %p340_p3 }
  0x31   :  { %255 = vmatpush3.bf16.msra.mxu0 %v281_v13 }
  0x32   :  { %256 = vmatprep.subr.bf16.mxu0 %v369_v3  ;;  %p343_p6 = pnand %p342_p5, %p336_p2 }
  0x35   :  { %257 = vmatpush3.bf16.msra.mxu0 %v282_v14 }
  0x36   :  { %258 = vmatprep.subr.bf16.mxu0 %v369_v3 }
  0x39   :  { %259 = vmatpush3.bf16.msra.mxu0 %v283_v15 }
  0x3a   :  { %260 = vmatprep.subr.bf16.mxu0 %v369_v3 }
  0x3d   :  { %261 = vmatpush3.bf16.msra.mxu0 %v284_v16 }
  0x3e   :  { %262 = vmatprep.subr.bf16.mxu0 %v369_v3 }
  0x41   :  { %263 = vmatpush3.bf16.msra.mxu0 %v285_v17 }
  0x42   :  { %264 = vmatprep.subr.bf16.mxu0 %v369_v3 }
  0x45   :  { %265 = vmatpush3.bf16.msra.mxu0 %v286_v18 }
  0xb5   :  { %v53_v4 = vpop.xlane.xlu0 %52 }
  0xb6   :  { %v57_v5 = vmul.f32 0.0078125, %v53_v4 }
  0xb8   :  { %v59_v6 = vsub.f32 %v429_v0, %v57_v5 }
  0xb9   :  { %v55_v7 = vpop.xlane.xlu0 %54 }
  0xba   :  { %v58_v8 = vmul.f32 0.0078125, %v55_v7  ;;  %v61_v9 = vmul.f32 %v59_v6, %v59_v6 }
  0xbc   :  { %v60_v10 = vsub.f32 %v431_v1, %v58_v8  ;;  %63 = vadd.xlane.f32.xlu1 %v61_v9 }
  0xbe   :  { %v62_v11 = vmul.f32 %v60_v10, %v60_v10 }
  0xc0   :  { %65 = vadd.xlane.f32.xlu1 %v62_v11 }
 0x149   :  { %v64_v19 = vpop.xlane.xlu1 %63 }
 0x14a   :  { %v67_v20 = vmul.f32 0.0078125, %v64_v19 }
 0x14c   :  { %v69_v21 = vadd.f32 1e-05, %v67_v20 }
 0x14d   :  { %v66_v22 = vpop.xlane.xlu1 %65 }
 0x14e   :  { %287 = vrsqrt.f32 %v69_v21  ;;  %v68_v23 = vmul.f32 0.0078125, %v66_v22 }
 0x150   :  { %v70_v24 = vadd.f32 1e-05, %v68_v23 }
 0x152   :  { %289 = vrsqrt.f32 %v70_v24 }
 0x158   :  { %v288_v25 = vpop.eup %287 }
 0x159   :  { %v73_v26 = vmul.f32 %v288_v25, %v59_v6 }
 0x15b   :  { %v82_v30 = vmul.f32 %v230_v27, %v73_v26 }
 0x15c   :  { %v290_v28 = vpop.eup %289 }
 0x15d   :  { %v74_v29 = vmul.f32 %v290_v28, %v60_v10  ;;  %v91_v33 = vadd.f32 %v231_v31, %v82_v30 }
 0x15f   :  { %v83_v32 = vmul.f32 %v230_v27, %v74_v29 }
 0x161   :  { %v92_v34 = vadd.f32 %v231_v31, %v83_v32 }
 0x163   :  { %v93_v35 = vpack.c.bf16 %v92_v34, %v91_v33 }
 0x165   :  { %267 = vmatmul.mubr.bf16.vlgmr.msra.gmra.mrb[0].mxu0 %v93_v35 }
 0x238   :  { %v192_v36 = vpop.f32.mrb[0].mxu0 }
 0x239   :  { %v199_v38 = vadd.f32 %v192_v36, %v429_v0  ;;  %v268_v39 = vpop.f32.mrb[1].mxu0 }
 0x23a   :  { %v195_v40 = vpop.f32.mrb[2].mxu0 }
 0x23b   :  { %v208_v41 = vadd.f32 %v240_v37, %v199_v38  ;;  %v200_v42 = vadd.f32 %v195_v40, %v431_v1  ;;  %v269_v43 = vpop.f32.mrb[3].mxu0 }
 0x23d   :  { %210 = vst [vmem:[#allocation7] sm:$0xff] %v208_v41  ;;  %v209_v44 = vadd.f32 %v240_v37, %v200_v42 }
 0x23f   :  { %211 = vst [vmem:[#allocation7 + $0x8] sm:$0xff] %v209_v44 }
 0x240   :  { %346 = shalt.err (!%p343_p6)
}
 0x241   :  { %s347_s27 = scalar_lea.hbm %s468_s5, 256 }
 0x242   :  { %p348_p7 = scmp.ne.s32.totalorder %s468_s5, %s347_s27  ;;  %p351_p8 = scmp.lt.u32.totalorder %s347_s27, %s468_s5 }
 0x244   :  { %p353_p9 = pnand %p351_p8, %p348_p7 }
 0x246   :  { %356 = shalt.err (!%p353_p9)
}
 0x247   :  { %223 = dma.vmem_to_hbm [thread:$0]  %s218_s25, 256, %s468_s5, [#allocation4], %s364_s28, %s364_s28, %s365_s29  }
 0x248   :  { %361 = dma.done.wait [#allocation4], 256  }
 0x249   :  { %362 = vsyncadd [#allocation4], 4294967040 }
 0x24a   :  { %227 = vsyncpa [#allocation3], 1 }
 0x24b   :  { %228 = vsyncpa [#allocation6], 1 }
 0x24c   :  { %229 = vsyncpa [#allocation4], 1 }

</bundles_post_ra>
